<compile_context>
chip_gen: v7x
topology: tpu7x:2x2x1
jax: 0.10.0
libtpu: 0.0.40
codegen_flags: <defaults>
</compile_context>

<pallas_src>
import jax
import jax.numpy as jnp
from jax.experimental import pallas as pl
from jax.experimental.pallas import tpu as pltpu


def attention_kernel(enc_ref, dec_proj_ref, w_enc_ref, out_ref):
    # enc_ref      : [S, Tb, 2E]   seq-major encoder block (native / optionally bf16)
    # dec_proj_ref : [Tb, A_pad]   precomputed decoder projection + bias (f32)
    # w_enc_ref    : [2E, A_pad]   encoder-side weight slice (attn_dim zero-padded)
    # out_ref      : [Tb, S]       softmax attention weights for this batch tile
    S, Tb, E2 = enc_ref.shape
    A = w_enc_ref.shape[1]

    # One 2-D MXU matmul over the flattened batch tile (operands in native dtype,
    # f32 accumulation).  Tb is a multiple of 8 -> layout-preserving reshapes.
    enc_flat = enc_ref[...].reshape(S * Tb, E2)
    enc_proj = jnp.dot(enc_flat, w_enc_ref[...],
                       preferred_element_type=jnp.float32).reshape(S, Tb, A)

    # energy = tanh(enc_proj + dec_proj)  -- f32 elementwise / EUP path.
    energy = jnp.tanh(enc_proj + dec_proj_ref[...][None, :, :])        # [S, Tb, A]

    # attn_dim sum on the XLU lane reduce (MXU stays free), then transpose only the
    # tiny [S, Tb] score matrix so softmax + store run batch-major.
    scores = jnp.sum(energy, axis=-1).T                                # [Tb, S]

    # Softmax along src_len with an exact divide (no approx reciprocal).
    m = jnp.max(scores, axis=-1, keepdims=True)
    e = jnp.exp(scores - m)
    denom = jnp.sum(e, axis=-1, keepdims=True)
    out_ref[...] = (e / denom).astype(out_ref.dtype)


def attention_forward(decoder_hidden, encoder_outputs, weight, bias,
                      enc_hid_dim, dec_hid_dim, attn_dim,
                      *, tile_b=8, compute_dtype=None):
    """decoder_hidden : [B, dec_hid_dim]
       encoder_outputs: [src_len, B, 2*enc_hid_dim]              (PyTorch seq-major layout)
       weight         : [attn_dim, 2*enc_hid_dim + dec_hid_dim]  (PyTorch Linear: out x in)
       bias           : [attn_dim]
       compute_dtype  : optional dtype (e.g. jnp.bfloat16) for the MXU operands
                        (encoder block + encoder weight slab); all accumulation and
                        elementwise math stays f32.
    """
    src_len, batch, two_enc = encoder_outputs.shape
    assert two_enc == 2 * enc_hid_dim
    attn_in = two_enc + dec_hid_dim
    assert weight.shape == (attn_dim, attn_in)
    assert bias.shape == (attn_dim,)

    # ---- Split the concat-Linear algebraically: cat(h, e) @ W.T = h @ W_dec + e @ W_enc.
    w_t = weight.T                                            # [attn_in, A]
    a_pad = int(pl.cdiv(attn_dim, 128)) * 128                 # lane-dense attn dim
    pad_a = a_pad - attn_dim
    w_dec = w_t[:dec_hid_dim, :]                              # [Dh, A]
    w_enc = w_t[dec_hid_dim:, :]                              # [2E, A]
    if pad_a:
        # Zero-padded columns: tanh(0) = 0 -> they add nothing to the attn_dim sum.
        w_enc = jnp.pad(w_enc, ((0, 0), (0, pad_a)))

    # ---- Hoisted decoder projection (+bias): tiny [B, A] matmul done once in XLA instead
    #      of being re-issued (and under-filling the MXU) for every batch tile.
    dec_proj = decoder_hidden @ w_dec + bias                  # [B, A]
    if pad_a:
        dec_proj = jnp.pad(dec_proj, ((0, 0), (0, pad_a)))
    dec_proj = dec_proj.astype(jnp.float32)

    # ---- Batch tiling: tile_b a multiple of 8 (sublane granularity); pad B so the last
    #      tile is full.  Padded rows form independent softmax rows and are sliced off.
    tile_b = max(8, int(pl.cdiv(int(tile_b), 8)) * 8)
    b_pad = int(pl.cdiv(batch, tile_b)) * tile_b
    pad_b = b_pad - batch
    enc = encoder_outputs                                     # [S, B, 2E] consumed seq-major:
    if pad_b:                                                 # no HBM transpose of the big tensor.
        enc = jnp.pad(enc, ((0, 0), (0, pad_b), (0, 0)))
        dec_proj = jnp.pad(dec_proj, ((0, pad_b), (0, 0)))
    if compute_dtype is not None:
        enc = enc.astype(compute_dtype)
        w_enc = w_enc.astype(compute_dtype)

    # ---- Per-step VMEM budget (double-buffered blocks + f32 temporaries) -> scoped limit.
    enc_bytes = jnp.dtype(enc.dtype).itemsize
    w_bytes = jnp.dtype(w_enc.dtype).itemsize
    vmem_est = (2 * src_len * tile_b * two_enc * enc_bytes        # encoder block (x2 buffers)
                + 2 * tile_b * a_pad * 4                          # dec_proj block
                + 2 * two_enc * a_pad * w_bytes                   # weight slab
                + 2 * tile_b * src_len * 4                        # output block
                + 4 * src_len * tile_b * a_pad * 4)               # f32 proj/energy temporaries
    vmem_limit = int(min(max(2 * vmem_est, 32 * 1024 * 1024), 100 * 1024 * 1024))

    grid = (b_pad // tile_b,)
    out = pl.pallas_call(
        attention_kernel,
        out_shape=jax.ShapeDtypeStruct((b_pad, src_len), decoder_hidden.dtype),
        grid_spec=pl.GridSpec(
            grid=grid,
            in_specs=[
                # Seq-major encoder tiled along batch only; full src_len per tile so the
                # softmax stays local to the block.
                pl.BlockSpec((src_len, tile_b, two_enc), lambda i: (0, i, 0)),
                pl.BlockSpec((tile_b, a_pad), lambda i: (i, 0)),
                pl.BlockSpec((two_enc, a_pad), lambda i: (0, 0)),
            ],
            out_specs=pl.BlockSpec((tile_b, src_len), lambda i: (i, 0)),
        ),
        compiler_params=pltpu.CompilerParams(
            dimension_semantics=("parallel",),          # megacore sharding on v7x
            vmem_limit_bytes=vmem_limit),
    )(enc, dec_proj, w_enc)
    return out if pad_b == 0 else out[:batch]


def _reference(decoder_hidden, encoder_outputs, weight, bias):
    # Pure-JAX reference mirroring the PyTorch forward exactly.
    src_len = encoder_outputs.shape[0]
    rep = jnp.repeat(decoder_hidden[:, None, :], src_len, axis=1)      # [B, S, Dh]
    enc = jnp.transpose(encoder_outputs, (1, 0, 2))                    # [B, S, 2E]
    cat = jnp.concatenate([rep, enc], axis=2)                          # [B, S, attn_in]
    energy = jnp.tanh(cat @ weight.T + bias)                           # [B, S, A]
    attention = jnp.sum(energy, axis=2)                                # [B, S]
    return jax.nn.softmax(attention, axis=1)


if __name__ == "__main__":
    enc_hid_dim = 16
    dec_hid_dim = 32
    attn_dim = 32
    batch = 16          # two batch tiles of 8 -> exercises the real ("parallel") grid
    src_len = 8
    attn_in = 2 * enc_hid_dim + dec_hid_dim

    key = jax.random.PRNGKey(0)
    k1, k2, k3, k4 = jax.random.split(key, 4)

    decoder_hidden = jax.random.normal(k1, (batch, dec_hid_dim), dtype=jnp.float32)
    encoder_outputs = jax.random.normal(k2, (src_len, batch, 2 * enc_hid_dim),
                                        dtype=jnp.float32)
    # Deterministic "Linear" params (PyTorch layout: [out_features, in_features]).
    bound = 1.0 / float(attn_in) ** 0.5
    weight = jax.random.uniform(k3, (attn_dim, attn_in), minval=-bound, maxval=bound,
                                dtype=jnp.float32)
    bias = jax.random.uniform(k4, (attn_dim,), minval=-bound, maxval=bound,
                              dtype=jnp.float32)

    ref = _reference(decoder_hidden, encoder_outputs, weight, bias)

    # --- f32 MXU-operand path (default). Residual diff vs the XLA reference is TPU f32
    #     matmul pass-precision, not a kernel approximation: the softmax itself uses an
    #     exact divide, which the 1e-5 row-sum check below demonstrates.
    out = attention_forward(decoder_hidden, encoder_outputs, weight, bias,
                            enc_hid_dim, dec_hid_dim, attn_dim, tile_b=8)
    out = jax.block_until_ready(out)
    assert out.shape == (batch, src_len)
    assert jnp.allclose(out, ref, atol=2e-3, rtol=2e-3)
    assert jnp.allclose(jnp.sum(out, axis=1), jnp.ones((batch,)), atol=1e-5)

    # --- bf16 MXU-operand path (v6e/v7x bandwidth/throughput option); elementwise stays f32.
    out_bf16 = attention_forward(decoder_hidden, encoder_outputs, weight, bias,
                                 enc_hid_dim, dec_hid_dim, attn_dim, tile_b=8,
                                 compute_dtype=jnp.bfloat16)
    out_bf16 = jax.block_until_ready(out_bf16)
    assert out_bf16.shape == (batch, src_len)
    assert jnp.allclose(out_bf16, ref, atol=3e-2, rtol=3e-2)
    assert jnp.allclose(jnp.sum(out_bf16, axis=1), jnp.ones((batch,)), atol=1e-5)

    print("KERNEL_OK")
</pallas_src>

<mosaic_0001>
module attributes {stable_mosaic.version = 11 : i64} {
  func.func @attention_kernel(%arg0: i32, %arg1: memref<8x8x32xf32, #tpu.memory_space<vmem>>, %arg2: memref<8x128xf32, #tpu.memory_space<vmem>>, %arg3: memref<32x128xf32, #tpu.memory_space<vmem>>, %arg4: memref<8x8xf32, #tpu.memory_space<vmem>>) attributes {dimension_semantics = [#tpu.dimension_semantics<parallel>], iteration_bounds = array<i64: 2>, scalar_prefetch = 0 : i64, scratch_operands = 0 : i64, tpu.core_type = #tpu.core_type<tc>, window_params = [{transform_indices = @transform_0, window_bounds = array<i64: 8, 8, 32>}, {transform_indices = @transform_1, window_bounds = array<i64: 8, 128>}, {pipeline_mode = #tpu.pipeline_mode<synchronous>, transform_indices = @transform_2, window_bounds = array<i64: 32, 128>}, {transform_indices = @transform_3, window_bounds = array<i64: 8, 8>}]} {
    %c0 = arith.constant 0 : index
    %c0_0 = arith.constant 0 : index
    %c0_1 = arith.constant 0 : index
    %0 = vector.load %arg1[%c0, %c0_0, %c0_1] : memref<8x8x32xf32, #tpu.memory_space<vmem>>, vector<8x8x32xf32>
    %1 = vector.shape_cast %0 : vector<8x8x32xf32> to vector<64x32xf32>
    %c0_2 = arith.constant 0 : index
    %c0_3 = arith.constant 0 : index
    %2 = vector.load %arg3[%c0_2, %c0_3] : memref<32x128xf32, #tpu.memory_space<vmem>>, vector<32x128xf32>
    %cst = arith.constant dense<0.000000e+00> : vector<64x128xf32>
    %3 = tpu.matmul %1, %2, %cst {dimension_numbers = #tpu.dot_dimension_numbers<[1], [0], [0], [1], [0, 0, 1, 1], [], []>} : vector<64x32xf32>, vector<32x128xf32>, vector<64x128xf32> -> vector<64x128xf32>
    %4 = vector.shape_cast %3 : vector<64x128xf32> to vector<8x8x128xf32>
    %c0_4 = arith.constant 0 : index
    %c0_5 = arith.constant 0 : index
    %5 = vector.load %arg2[%c0_4, %c0_5] : memref<8x128xf32, #tpu.memory_space<vmem>>, vector<8x128xf32>
    %6 = vector.shape_cast %5 : vector<8x128xf32> to vector<1x8x128xf32>
    %7 = vector.broadcast %6 : vector<1x8x128xf32> to vector<8x8x128xf32>
    %8 = arith.addf %4, %7 : vector<8x8x128xf32>
    %9 = math.tanh %8 : vector<8x8x128xf32>
    %cst_6 = arith.constant dense<0.000000e+00> : vector<8x8xf32>
    %10 = vector.multi_reduction <add>, %9, %cst_6 [2] : vector<8x8x128xf32> to vector<8x8xf32>
    %11 = tpu.transpose %10, [1, 0] : vector<8x8xf32> -> vector<8x8xf32>
    %cst_7 = arith.constant dense<0xFF800000> : vector<8xf32>
    %12 = vector.multi_reduction <maximumf>, %11, %cst_7 [1] : vector<8x8xf32> to vector<8xf32>
    %13 = vector.shape_cast %12 : vector<8xf32> to vector<8x1xf32>
    %14 = vector.broadcast %13 : vector<8x1xf32> to vector<8x8xf32>
    %15 = arith.subf %11, %14 : vector<8x8xf32>
    %16 = math.exp %15 : vector<8x8xf32>
    %cst_8 = arith.constant dense<0.000000e+00> : vector<8xf32>
    %17 = vector.multi_reduction <add>, %16, %cst_8 [1] : vector<8x8xf32> to vector<8xf32>
    %18 = vector.shape_cast %17 : vector<8xf32> to vector<8x1xf32>
    %19 = vector.broadcast %18 : vector<8x1xf32> to vector<8x8xf32>
    %20 = arith.divf %16, %19 : vector<8x8xf32>
    %c0_9 = arith.constant 0 : index
    %c0_10 = arith.constant 0 : index
    %21 = vector.load %arg4[%c0_9, %c0_10] : memref<8x8xf32, #tpu.memory_space<vmem>>, vector<8x8xf32>
    tpu.vector_store %arg4[%c0_9, %c0_10], %20 {strides = array<i32>} : memref<8x8xf32, #tpu.memory_space<vmem>>, vector<8x8xf32>,
    return
  }
  func.func @transform_0(%arg0: i32) -> (i32, i32, i32) {
    %c0_i32 = arith.constant 0 : i32
    %c0_i32_0 = arith.constant 0 : i32
    %c0_i32_1 = arith.constant 0 : i32
    return %c0_i32, %arg0, %c0_i32_0 : i32, i32, i32
  }
  func.func @transform_1(%arg0: i32) -> (i32, i32) {
    %c0_i32 = arith.constant 0 : i32
    %c0_i32_0 = arith.constant 0 : i32
    return %arg0, %c0_i32 : i32, i32
  }
  func.func @transform_2(%arg0: i32) -> (i32, i32) {
    %c0_i32 = arith.constant 0 : i32
    %c0_i32_0 = arith.constant 0 : i32
    %c0_i32_1 = arith.constant 0 : i32
    return %c0_i32, %c0_i32_0 : i32, i32
  }
  func.func @transform_3(%arg0: i32) -> (i32, i32) {
    %c0_i32 = arith.constant 0 : i32
    %c0_i32_0 = arith.constant 0 : i32
    return %arg0, %c0_i32 : i32, i32
  }
}

</mosaic_0001>

<bundles_post_ra>
// kernel: tpu_custom_call.1
= control target key start
LH: loop header
LB: loop body
LE: loop exit
PB: predicated region body
PF: predicated region fallthrough
CT: control target
= control target key end

     0   :  { %8 = vsyncpa [#allocation3], 0  ;;  %s1134_s0 = inlined_call_operand.hbm [shape: f32[8,16,32], index: 0, kind: input, shape index: {}]   ;;  %s1135_s1 = inlined_call_operand.hbm [shape: f32[16,128], index: 1, kind: input, shape index: {}]   ;;  %s1136_s2 = inlined_call_operand.hbm [shape: f32[32,128], index: 2, kind: input, shape index: {}]   ;;  %s1137_s3 = inlined_call_operand.vmem [shape: f32[16,8], index: 3, kind: output, shape index: {}]  }
   0x1   :  { %10 = vsyncpa [#allocation3 + $0x1], 0 }
   0x2   :  { %11 = vsyncpa [#allocation5], 0 }
   0x3   :  { %13 = vsyncpa [#allocation5 + $0x1], 0  ;;  %s917_s12 = smov 0   ;;  %s919_s13 = smov 0  }
   0x4   :  { %s921_s14 = smov 0   ;;  %s923_s15 = smov 0  }
   0x5 LB: > { %s936_s16 = sadd.s32 4294967295, %s889_s15   ;;  %s939_s17 = sadd.s32 1, %s889_s15   ;;  %s889_s15 = sphi %s923_s15, %s1155_s15   ;;  %s885_s14 = sphi %s921_s14, %s1154_s14   ;;  %s881_s13 = sphi %s919_s13, %s1153_s13   ;;  %s877_s12 = sphi %s917_s12, %s1152_s12  }
   0x6   : > { %s23_s18 = ssub.s32 %s889_s15, %s939_s17  ;;  %s26_s19 = sadd.s32 1, %s885_s14 }
   0x7   : > { %p24_p0 = scmp.eq.s32.totalorder %s23_s18, 0  ;;  %p33_p1 = scmp.ne.s32.totalorder %s885_s14, %s881_s13 }
   0x8   : > { %p34_p2 = scmp.eq.s32.totalorder %s889_s15, 0  ;;  %p39_p3 = scmp.ne.s32.totalorder %s881_s13, %s877_s12 }
   0x9   : > { %s949_s20 = scalar_select %p24_p0, %s885_s14, %s26_s19  }
   0xa   : > { %p951_p4 = por %p34_p2, %p33_p1  ;;  %p1138_p5 = scmp.eq.s32.totalorder %s936_s16, 0 }
   0xb   : > { %p614_p6 = scmp.ge.s32.totalorder %s889_s15, 1  ;;  %p123_p7 = scmp.lt.s32.totalorder %s889_s15, 3 }
   0xc   : > { %p960_p8 = por %p1138_p5, %p39_p3  ;;  %s891_s24 = smov [#allocation6]  }
   0xd   : > { %p964_p9 = pnand %p614_p6, %p123_p7  ;;  %s135_s25 = sshll.u32 %s891_s24, 4  ;;  %s136_s25 = int_to_ptr.vmem [resolvable:$true] %s135_s25 }
   0xe   : > { %s1143_s22 = scalar_select %p960_p8, 1, 0 }
   0xf   : > { %s1144_s23 = scalar_select %p964_p9, 1, 0 }
  0x10   : > { %p688_p10 = pneg %p964_p9  ;;  %p700_p12 = scmp.lt.s32.totalorder %s889_s15, 2 }
  0x11   : > { %s978_s27 = sand.u32 1, %s885_s14   ;;  %s618_s28 = sshll.u32 %s889_s15, 7 }
  0x12   : > { %p972_p11 = pnand %p688_p10, %p1138_p5  ;;  %p983_p13 = pnand %p700_p12, %p951_p4 }
  0x13   : > { %s759_s5 = scalar_lea.hbm %s1136_s2, 512 }
  0x14   : > { %s1146_s29 = scalar_select %p983_p13, 1, 0 }
  0x15   : > { %p760_p0 = scmp.ne.s32.totalorder %s1136_s2, %s759_s5  ;;  %p761_p1 = pneg %p972_p11 }
  0x16   : > { %p766_p6 = scmp.lt.u32.totalorder %s759_s5, %s1136_s2 }
  0x17   : > { %p762_p2 = pnand %p761_p1, %p760_p0 }
  0x19   : > { %p763_p3 = pneg %p762_p2 }
  0x1b   : > { %p768_p4 = pnand %p766_p6, %p763_p3 }
  0x1d   : > { %771 = shalt.err (!%p768_p4)
}
  0x1e   : > { %s772_s10 = scalar_lea.vmem %s136_s25, 512  ;;  %p780_p5 = scmp.lt.s32.totalorder %s136_s25, %s136_s25 }
  0x1f   : > { %p773_p7 = scmp.ne.s32.totalorder %s136_s25, %s772_s10  ;;  %p781_p8 = scmp.lt.s32.totalorder %s772_s10, %s772_s10 }
  0x21   : > { %p775_p10 = pnand %p773_p7, %p761_p1  ;;  %p782_p9 = por %p781_p8, %p780_p5 }
  0x23   : > { %p776_p12 = pneg %p775_p10 }
  0x25   : > { %p783_p13 = pnand %p782_p9, %p776_p12 }
  0x27   : > { %786 = shalt.err (!%p783_p13)
}
  0x28   : > { %s892_s11 = smov 128   ;;  %s893_s12 = smov 8  }
  0x29   : > { %691 = dma.hbm_to_vmem [thread:$0]  (!%p972_p11), %s1136_s2, 512, %s136_s25, [#allocation5], %s892_s11, %s892_s11, %s893_s12  }
  0x2a   : > { %s617_s21 = sshll.u32 %s978_s27, 6  ;;  %s1012_s4 = scalar_lea.hbm %s1134_s0, %s618_s28 }
  0x2b   : > { %s153_s5 = scalar_lea.vmem [#allocation2], %s617_s21  ;;  %s169_s6 = sand.u32 1, %s889_s15  }
  0x2c   : > { %s159_s26 = sshll.u32 %s153_s5, 4  ;;  %s150_s7 = scalar_lea.sflag [#allocation3], %s978_s27  ;;  %s1015_s26 = int_to_ptr.vmem [resolvable:$true] %s159_s26 }
  0x2d   : > { %s787_s8 = scalar_lea.hbm %s1012_s4, 1024  ;;  %p1147_p8 = scmp.ne.s32.totalorder %s1146_s29, 0 }
  0x2e   : > { %p788_p5 = scmp.ne.s32.totalorder %s1012_s4, %s787_s8  ;;  %s792_s10 = scalar_lea.hbm %s1134_s0, 2048 }
  0x2f   : > { %p789_p9 = pneg %p1147_p8  ;;  %p793_p0 = scmp.lt.u32.totalorder %s1012_s4, %s1134_s0 }
  0x30   : > { %p794_p1 = scmp.lt.u32.totalorder %s792_s10, %s787_s8  ;;  %p796_p3 = scmp.lt.u32.totalorder %s787_s8, %s1012_s4 }
  0x31   : > { %p790_p11 = pnand %p789_p9, %p788_p5 }
  0x32   : > { %p795_p2 = por %p794_p1, %p793_p0 }
  0x33   : > { %p791_p13 = pneg %p790_p11 }
  0x34   : > { %p797_p6 = por %p796_p3, %p795_p2 }
  0x36   : > { %p798_p4 = pnand %p797_p6, %p791_p13 }
  0x38   : > { %801 = shalt.err (!%p798_p4)
}
  0x39   : > { %s802_s21 = scalar_lea.vmem %s1015_s26, 1024  ;;  %s894_s24 = smov [#allocation2]  }
  0x3a   : > { %p803_p7 = scmp.ne.s32.totalorder %s1015_s26, %s802_s21  ;;  %s807_s30 = sshll.u32 %s894_s24, 4  ;;  %s808_s30 = int_to_ptr.vmem [resolvable:$false] %s807_s30 }
  0x3b   : > { %s809_s5 = scalar_lea.vmem %s808_s30, 2048  ;;  %p810_p5 = scmp.lt.s32.totalorder %s1015_s26, %s808_s30 }
  0x3c   : > { %p805_p10 = pnand %p803_p7, %p789_p9  ;;  %p811_p11 = scmp.lt.s32.totalorder %s809_s5, %s802_s21 }
  0x3e   : > { %p806_p12 = pneg %p805_p10  ;;  %p812_p0 = por %p811_p11, %p810_p5 }
  0x40   : > { %p813_p1 = pnand %p812_p0, %p806_p12 }
  0x42   : > { %816 = shalt.err (!%p813_p1)
}
  0x43   : > { %s895_s8 = smov 256   ;;  %s619_s25 = sshll.u32 %s978_s27, 3 }
  0x44   : > { %695 = dma.hbm_to_vmem [thread:$0]  (!%p1147_p8), %s1012_s4, 1024, %s1015_s26, %s150_s7, %s895_s8, %s892_s11, %s893_s12  }
  0x45   : > { %s1053_s18 = scalar_lea.hbm %s1135_s1, %s618_s28  ;;  %s173_s19 = scalar_lea.vmem [#allocation4], %s619_s25 }
  0x46   : > { %s180_s21 = sshll.u32 %s173_s19, 4  ;;  %s170_s24 = scalar_lea.sflag [#allocation5], %s169_s6  ;;  %s181_s21 = int_to_ptr.vmem [resolvable:$true] %s180_s21 }
  0x47   : > { %s817_s30 = scalar_lea.hbm %s1053_s18, 128  ;;  %s822_s28 = scalar_lea.hbm %s1135_s1, 256 }
  0x48   : > { %p818_p13 = scmp.ne.s32.totalorder %s1053_s18, %s817_s30  ;;  %p823_p6 = scmp.lt.u32.totalorder %s1053_s18, %s1135_s1 }
  0x49   : > { %p824_p4 = scmp.lt.u32.totalorder %s822_s28, %s817_s30  ;;  %p826_p10 = scmp.lt.u32.totalorder %s817_s30, %s1053_s18 }
  0x4a   : > { %p820_p2 = pnand %p818_p13, %p789_p9 }
  0x4b   : > { %p825_p7 = por %p824_p4, %p823_p6 }
  0x4c   : > { %p821_p3 = pneg %p820_p2 }
  0x4d   : > { %p827_p12 = por %p826_p10, %p825_p7 }
  0x4f   : > { %p828_p5 = pnand %p827_p12, %p821_p3 }
  0x51   : > { %831 = shalt.err (!%p828_p5)
}
  0x52   : > { %s832_s15 = scalar_lea.vmem %s181_s21, 128  ;;  %s896_s26 = smov [#allocation4]  }
  0x53   : > { %p833_p11 = scmp.ne.s32.totalorder %s181_s21, %s832_s15  ;;  %s837_s6 = sshll.u32 %s896_s26, 4  ;;  %s838_s6 = int_to_ptr.vmem [resolvable:$false] %s837_s6 }
  0x54   : > { %s839_s7 = scalar_lea.vmem %s838_s6, 256  ;;  %p840_p13 = scmp.lt.s32.totalorder %s181_s21, %s838_s6 }
  0x55   : > { %p835_p0 = pnand %p833_p11, %p789_p9  ;;  %p841_p2 = scmp.lt.s32.totalorder %s839_s7, %s832_s15 }
  0x57   : > { %p836_p1 = pneg %p835_p0  ;;  %p842_p4 = por %p841_p2, %p840_p13 }
  0x59   : > { %p843_p6 = pnand %p842_p4, %p836_p1 }
  0x5b   : > { %846 = shalt.err (!%p843_p6)
}
  0x5c   : > { %698 = dma.hbm_to_vmem [thread:$0]  (!%p1147_p8), %s1053_s18, 128, %s181_s21, %s170_s24  }
  0x5d   : > { %p1148_p3 = scmp.ne.s32.totalorder %s1144_s23, 0 }
  0x5e   : > { %s191_s5 = sand.u32 (!%p1148_p3), 1, %s881_s13   ;;  %p1149_p9 = scmp.ne.s32.totalorder (!%p1148_p3), %s1143_s22, 0 }
  0x5f   : > { %189 = sbr.rel (%p1148_p3) target bundleno = 950 (0x3b6), region = 32  ;;  %s622_s8 = sshll.u32 (!%p1148_p3), %s191_s5, 6 }
  0x60   : > { %s192_s25 = scalar_lea.sflag (!%p1148_p3), [#allocation3], %s191_s5  ;;  %s1079_s9 = scalar_lea.vmem (!%p1148_p3), [#allocation2], %s622_s8 }
  0x66   : > { %864 = dma.done.wait (%p1149_p9), %s192_s25, 1024  }
  0x67   : > { %866 = vsyncadd (%p1149_p9), %s192_s25, 4294966272  ;;  %s200_s29 = sand.u32 1, %s936_s16   ;;  %s623_s10 = sshll.u32 %s191_s5, 3 }
  0x68   : > { %s201_s18 = scalar_lea.sflag [#allocation5], %s200_s29  ;;  %s1086_s19 = scalar_lea.vmem [#allocation4], %s623_s10 }
  0x69   : > { %868 = dma.done.wait (%p1149_p9), %s201_s18, 128  }
  0x6a   : > { %870 = vsyncadd (%p1149_p9), %s201_s18, 4294967168  ;;  %p1150_p8 = scmp.eq.s32.totalorder %s936_s16, 0 }
  0x6c   : > { %872 = dma.done.wait (%p1150_p8), [#allocation5], 512   ;;  %p1151_p7 = pmov %p1150_p8 }
  0x6d   : > { %vm251_vm0 = vcmask 261120   ;;  %v247_v0 = vld [vmem:[#allocation6] sm:$0xff]  ;;  %v248_v1 = vld [vmem:[#allocation6 + $0x8] sm:$0xff]  ;;  %v249_v2 = vld [vmem:[#allocation6 + $0x10] sm:$0xff]  ;;  %v422_v39 = vlaneseq  ;;  %vm456_vm1 = vcmask 1041409   ;;  %vm458_vm2 = vcmask 1042434  }
  0x6e   : > { %874 = vsyncadd (%p1151_p7), [#allocation5], 4294966784  ;;  %v668_v3 = vpack.c.bf16 %v248_v1, %v247_v0  ;;  %v250_v4 = vld [vmem:[#allocation6 + $0x18] sm:$0xff]  ;;  %v239_v5 = vld [vmem:[%s1079_s9] sm:$0xff]  ;;  %vm460_vm3 = vcmask 1043459   ;;  %vm462_vm4 = vcmask 1044484  }
  0x6f   : > { %v672_v6 = vpack.c.bf16 %v250_v4, %v249_v2  ;;  %656 = vmatprep.mubr.msk.f32.mxu0 %vm251_vm0, %v239_v5  ;;  %v243_v7 = vld [vmem:[%s1079_s9 + $0x20] sm:$0xff]  ;;  %v240_v8 = vld [vmem:[%s1079_s9 + $0x8] sm:$0xff]  ;;  %v241_v10 = vld [vmem:[%s1079_s9 + $0x10] sm:$0xff]  ;;  %v423_v40 = vand.u32 127, %v422_v39  ;;  %v425_v41 = vshrl.u32 %v422_v39, 7  ;;  %vm464_vm5 = vcmask 1045509  }
  0x70   : > { %669 = vmatprep.subr.bf16.mxu0 %v668_v3  ;;  %676 = vmatprep.subr.bf16.mxu1 %v668_v3  ;;  %v244_v9 = vld [vmem:[%s1079_s9 + $0x28] sm:$0xff]  ;;  %v245_v11 = vld [vmem:[%s1079_s9 + $0x30] sm:$0xff]  ;;  %v242_v12 = vld [vmem:[%s1079_s9 + $0x18] sm:$0xff]  ;;  %vm466_vm6 = vcmask 1046534   ;;  %vm468_vm7 = vcmask 1047559   ;;  %vm503_vm8 = vcmask 64512  }
  0x71   : > { %671 = vmatpush3.bf16.msra.mxu0 %v668_v3  ;;  %678 = vmatpush3.bf16.msra.mxu1 %v668_v3  ;;  %v246_v13 = vld [vmem:[%s1079_s9 + $0x38] sm:$0xff]  ;;  %v381_v14 = vld [vmem:[%s1086_s19] sm:$0xff]  ;;  %v426_v43 = vsub.s32 %v423_v40, %v425_v41  ;;  %p235_p10 = scmp.lt.s32.totalorder %s936_s16, 1 }
  0x72   : > { %673 = vmatprep.subr.bf16.mxu0 %v672_v6  ;;  %677 = vmatprep.subr.bf16.mxu1 %v672_v6 }
  0x73   : > { %662 = vmatprep.mubr.msk.f32.mxu1 %vm251_vm0, %v243_v7  ;;  %s1157_s16 = smov (!%p235_p10, %s936_s16), 1 }
  0x74   : > { %s625_s22 = sshll.u32 %s1157_s16, 3 }
  0x75   : > { %675 = vmatpush3.bf16.msra.mxu0 %v672_v6  ;;  %679 = vmatpush3.bf16.msra.mxu1 %v672_v6  ;;  %s238_s24 = scalar_lea.vmem %s1137_s3, %s625_s22 }
  0x78   : > { %657 = vmatmul.mubr.msk.f32.vlgmr.msra.gmra.mrb[0].mxu0 %vm251_vm0, %v240_v8  ;;  %663 = vmatmul.mubr.msk.f32.vlgmr.msra.gmra.mrb[0].mxu1 %vm251_vm0, %v244_v9 }
  0x79   : > { %659 = vmatprep.mubr.msk.f32.mxu0 %vm251_vm0, %v241_v10  ;;  %665 = vmatprep.mubr.msk.f32.mxu1 %vm251_vm0, %v245_v11 }
  0x7c   : > { %660 = vmatmul.mubr.msk.f32.gmra.mrb[2].mxu0 %vm251_vm0, %v242_v12  ;;  %666 = vmatmul.mubr.msk.f32.gmra.mrb[2].mxu1 %vm251_vm0, %v246_v13 }
 0x14b   : > { %v658_v15 = vpop.f32.mrb[0].mxu0  ;;  %v664_v16 = vpop.f32.mrb[0].mxu1 }
 0x14c   : > { %v383_v17 = vadd.f32 %v658_v15, %v381_v14  ;;  %v342_v18 = vpop.f32.mrb[1].mxu0  ;;  %v362_v19 = vpop.f32.mrb[1].mxu1  ;;  %v387_v29 = vadd.f32 %v664_v16, %v381_v14 }
 0x14d   : > { %v382_v20 = vadd.f32 %v381_v14, %v342_v18  ;;  %v386_v25 = vadd.f32 %v381_v14, %v362_v19 }
 0x14e   : > { %739 = vtanh.f32 %v383_v17 }
 0x14f   : > { %v661_v21 = vpop.f32.mrb[2].mxu0  ;;  %v667_v22 = vpop.f32.mrb[2].mxu1  ;;  %741 = vtanh.f32 %v382_v20 }
 0x150   : > { %v385_v23 = vadd.f32 %v661_v21, %v381_v14  ;;  %v352_v24 = vpop.f32.mrb[3].mxu0  ;;  %v372_v26 = vpop.f32.mrb[3].mxu1  ;;  %v389_v31 = vadd.f32 %v667_v22, %v381_v14 }
 0x151   : > { %v384_v27 = vadd.f32 %v381_v14, %v352_v24  ;;  %v388_v28 = vadd.f32 %v381_v14, %v372_v26 }
 0x152   : > { %743 = vtanh.f32 %v385_v23 }
 0x153   : > { %745 = vtanh.f32 %v386_v25 }
 0x154   : > { %747 = vtanh.f32 %v384_v27 }
 0x155   : > { %749 = vtanh.f32 %v388_v28 }
 0x156   : > { %751 = vtanh.f32 %v387_v29 }
 0x157   : > { %753 = vtanh.f32 %v389_v31 }
 0x158   : > { %v740_v30 = vpop.eup %739 }
 0x159   : > { %400 = vadd.xlane.f32.xlu0 %v740_v30  ;;  %v742_v32 = vpop.eup %741 }
 0x15c   : > { %v744_v33 = vpop.eup %743 }
 0x15d   : > { %398 = vadd.xlane.f32.xlu0 %v742_v32  ;;  %404 = vadd.xlane.f32.xlu1 %v744_v33  ;;  %v746_v34 = vpop.eup %745 }
 0x15e   : > { %v748_v35 = vpop.eup %747 }
 0x15f   : > { %v750_v36 = vpop.eup %749 }
 0x160   : > { %v752_v37 = vpop.eup %751 }
 0x161   : > { %402 = vadd.xlane.f32.xlu1 %v748_v35  ;;  %406 = vadd.xlane.f32.xlu0 %v746_v34  ;;  %v754_v38 = vpop.eup %753 }
 0x165   : > { %408 = vadd.xlane.f32.xlu1 %v752_v37  ;;  %410 = vadd.xlane.f32.xlu0 %v750_v36 }
 0x169   : > { %412 = vadd.xlane.f32.xlu1 %v754_v38 }
 0x1e6   : > { %v401_v42 = vpop.xlane.xlu0 %400 }
 0x1e7   : > { %v431_v47 = vrot.slane %v401_v42, %v426_v43 }
 0x1ea   : > { %v399_v44 = vpop.xlane.xlu0 %398  ;;  %v405_v45 = vpop.xlane.xlu1 %404 }
 0x1eb   : > { %v427_v46 = vrot.slane %v399_v44, %v426_v43  ;;  %v439_v53 = vrot.slane %v405_v45, %v426_v43 }
 0x1ed   : > { %v457_v52 = vsel %vm456_vm1, %v431_v47, %v427_v46 }
 0x1ee   : > { %v403_v48 = vpop.xlane.xlu1 %402  ;;  %v407_v49 = vpop.xlane.xlu0 %406 }
 0x1ef   : > { %v435_v50 = vrot.slane %v403_v48, %v426_v43  ;;  %v443_v51 = vrot.slane %v407_v49, %v426_v43 }
 0x1f1   : > { %v459_v54 = vsel %vm458_vm2, %v435_v50, %v457_v52 }
 0x1f2   : > { %v461_v55 = vsel %vm460_vm3, %v439_v53, %v459_v54  ;;  %v409_v56 = vpop.xlane.xlu1 %408  ;;  %v411_v57 = vpop.xlane.xlu0 %410 }
 0x1f3   : > { %v463_v58 = vsel %vm462_vm4, %v443_v51, %v461_v55  ;;  %v447_v59 = vrot.slane %v409_v56, %v426_v43  ;;  %v451_v60 = vrot.slane %v411_v57, %v426_v43 }
 0x1f5   : > { %v465_v61 = vsel %vm464_vm5, %v447_v59, %v463_v58 }
 0x1f6   : > { %v413_v62 = vpop.xlane.xlu1 %412  ;;  %v467_v0 = vsel %vm466_vm6, %v451_v60, %v465_v61 }
 0x1f7   : > { %v455_v63 = vrot.slane %v413_v62, %v426_v43 }
 0x1f9   : > { %v469_v1 = vsel %vm468_vm7, %v455_v63, %v467_v0 }
 0x1fa   : > { %471 = vxpose.xlu0.b32.start.end [1/1] (short) (narrow) %v469_v1, 8 }
 0x27a   : > { %v487_v2 = vpop.trf.xlu0 }
 0x27b   : > { %v504_v3 = vsel %vm503_vm8, %v487_v2, -inf }
 0x27c   : > { %505 = vmax.xlane.f32.xlu1 %v504_v3 }
 0x309   : > { %v506_v4 = vpop.xlane.xlu1 %505 }
 0x30a   : > { %v507_v5 = vsub.f32 %v487_v2, %v506_v4 }
 0x30c   : > { %v508_v6 = vmul.f32 1.442695, %v507_v5 }
 0x30e   : > { %755 = vpow2.f32 %v508_v6 }
 0x318   : > { %v756_v7 = vpop.eup %755 }
 0x319   : > { %v510_v8 = vsel %vm503_vm8, %v756_v7, 0.0 }
 0x31a   : > { %511 = vadd.xlane.f32.xlu1 %v510_v8 }
 0x3a7   : > { %v512_v9 = vpop.xlane.xlu1 %511 }
 0x3a8   : > { %757 = vrcp.f32 %v512_v9 }
 0x3b2   : > { %v758_v10 = vpop.eup %757 }
 0x3b3   : > { %v514_v11 = vmul.f32 %v758_v10, %v756_v7 }
 0x3b5   : > { %515 = vst.msk [vmem:[%s238_s24] sm:$0xff] %vm503_vm8, %v514_v11 }
 0x3b6 PF: > { %p16_p12 = scmp.ge.s32.totalorder %s939_s17, 4   ;;  %s1152_s12 = smov %s881_s13 }
 0x3b7   : > { %s1153_s13 = smov %s885_s14  ;;  %s1154_s14 = smov %s949_s20 }
 0x3b8   : > { %s1155_s15 = smov %s939_s17  ;;  %18 = sbr.rel (!%p16_p12) target bundleno = 5 (0x5), region = 89 }
 0x3bf   :  { %535 = vsyncpa [#allocation3], 1 }
 0x3c0   :  { %537 = vsyncpa [#allocation3 + $0x1], 1 }
 0x3c1   :  { %538 = vsyncpa [#allocation5], 1 }
 0x3c2   :  { %540 = vsyncpa [#allocation5 + $0x1], 1 }

</bundles_post_ra>
